<compile_context>
chip_gen: v7x
topology: tpu7x:2x2x1
jax: 0.10.0
libtpu: 0.0.40
codegen_flags: <defaults>
</compile_context>

<pallas_src>
import functools

import jax
import jax.numpy as jnp
from jax.experimental import pallas as pl
from jax.experimental.pallas import tpu as pltpu

LANE = 128


def _embedder_kernel(x_ref, w1_ref, b1_ref, w3_ref, b3_ref, rand_ref, o_ref,
                     *, copies, keep_thresh, inv_keep):
    # ---- layer1: Linear -> ReLU (computed once for the N unique rows) ----
    h = jnp.dot(x_ref[...], w1_ref[...], preferred_element_type=jnp.float32)
    h = jnp.maximum(h + b1_ref[...], 0.0)                   # (N, emb_p)

    # ---- replicate for the `copies` embeddings handled by this tile ----
    if copies > 1:
        h = jnp.concatenate([h] * copies, axis=0)            # (copies*N, emb_p)

    # ---- Dropout (inverted dropout): keep iff u >= p, scale by 1/(1-p) ----
    # In eval mode keep_thresh == 0.0 and inv_keep == 1.0 (identity).
    keep = rand_ref[...] >= jnp.float32(keep_thresh)
    h = jnp.where(keep, h * jnp.float32(inv_keep), 0.0)

    # ---- layer3: Linear ----
    y = jnp.dot(h, w3_ref[...], preferred_element_type=jnp.float32) + b3_ref[...]
    o_ref[...] = y.astype(o_ref.dtype)


def cartpole_embedder_forward(params, x, *, B, dropout_p, training=True,
                              dropout_key=None, target_tile_rows=512):
    """x: (N, input_size) float32. Returns (B*N, embedding_size) float32."""
    N, in_size = x.shape
    emb = params["w1"].shape[1]
    emb_p = ((emb + LANE - 1) // LANE) * LANE                # pad features to 128 lanes
    M = B * N

    # Zero-pad params to lane-dense layouts (padding contributes exact zeros).
    pad_c = emb_p - emb
    w1 = jnp.pad(params["w1"], ((0, 0), (0, pad_c)))
    b1 = jnp.pad(params["b1"], ((0, 0), (0, pad_c)))
    w3 = jnp.pad(params["w3"], ((0, pad_c), (0, pad_c)))
    b3 = jnp.pad(params["b3"], ((0, 0), (0, pad_c)))

    apply_dropout = bool(training) and float(dropout_p) > 0.0
    if apply_dropout:
        if dropout_key is None:
            dropout_key = jax.random.PRNGKey(0)
        rand = jax.random.uniform(dropout_key, (M, emb_p), jnp.float32)
        keep_thresh = float(dropout_p)
        inv_keep = 1.0 / (1.0 - float(dropout_p))
    else:
        rand = jnp.zeros((M, emb_p), jnp.float32)            # always kept
        keep_thresh = 0.0
        inv_keep = 1.0

    # How many of the B replicas each grid step handles (big tiles -> few steps).
    copies = max(1, min(B, max(1, target_tile_rows // max(N, 1))))
    while B % copies:
        copies -= 1
    num_tiles = B // copies
    tile_rows = copies * N
    assert num_tiles * tile_rows == M
    assert num_tiles == 1 or tile_rows % 8 == 0, \
        "multi-tile grids need sublane-aligned row tiles"

    kernel = functools.partial(
        _embedder_kernel, copies=copies,
        keep_thresh=keep_thresh, inv_keep=inv_keep)

    out_p = pl.pallas_call(
        kernel,
        out_shape=jax.ShapeDtypeStruct((M, emb_p), jnp.float32),
        grid=(num_tiles,),
        in_specs=[
            pl.BlockSpec((N, in_size), lambda t: (0, 0)),        # x (resident)
            pl.BlockSpec((in_size, emb_p), lambda t: (0, 0)),    # W1 (resident)
            pl.BlockSpec((1, emb_p), lambda t: (0, 0)),          # b1
            pl.BlockSpec((emb_p, emb_p), lambda t: (0, 0)),      # W3 (resident)
            pl.BlockSpec((1, emb_p), lambda t: (0, 0)),          # b3
            pl.BlockSpec((tile_rows, emb_p), lambda t: (t, 0)),  # dropout uniforms
        ],
        out_specs=pl.BlockSpec((tile_rows, emb_p), lambda t: (t, 0)),
        compiler_params=pltpu.CompilerParams(
            dimension_semantics=("parallel",)),
    )(x, w1, b1, w3, b3, rand)

    return out_p[:, :emb]


def init_params(key, input_size, embedding_size):
    """Deterministic init mimicking nn.Linear's U(-1/sqrt(fan_in), 1/sqrt(fan_in))."""
    ks = jax.random.split(key, 6)

    def linear(kw, kb, fan_in, fan_out):
        bound = 1.0 / float(fan_in) ** 0.5
        w = jax.random.uniform(kw, (fan_in, fan_out), jnp.float32, -bound, bound)
        b = jax.random.uniform(kb, (1, fan_out), jnp.float32, -bound, bound)
        return w, b

    w1, b1 = linear(ks[0], ks[1], input_size, embedding_size)
    w2, b2 = linear(ks[2], ks[3], embedding_size, embedding_size)  # unused in forward
    w3, b3 = linear(ks[4], ks[5], embedding_size, embedding_size)
    return {"w1": w1, "b1": b1, "w2": w2, "b2": b2, "w3": w3, "b3": b3}


if __name__ == "__main__":
    # Small shapes implied by the module: CartPole state dim 4, B dropout
    # replicas of each state concatenated along the batch axis.
    B = 4
    N = 8                  # rows in the original input batch
    input_size = 4
    embedding_size = 32
    dropout_p = 0.1

    key = jax.random.PRNGKey(0)
    kp, kx, kd = jax.random.split(key, 3)
    params = init_params(kp, input_size, embedding_size)
    x = jax.random.normal(kx, (N, input_size), jnp.float32)

    # --- eval-mode correctness check against a pure-JAX reference ---
    out_eval = cartpole_embedder_forward(
        params, x, B=B, dropout_p=dropout_p, training=False)
    out_eval = jax.block_until_ready(out_eval)

    x_rep = jnp.concatenate([x] * B, axis=0)
    h_ref = jnp.maximum(x_rep @ params["w1"] + params["b1"], 0.0)
    y_ref = h_ref @ params["w3"] + params["b3"]
    assert out_eval.shape == (B * N, embedding_size)
    assert jnp.allclose(out_eval, y_ref, atol=1e-5, rtol=1e-5), "eval mismatch"

    # --- training-mode check (same dropout uniforms regenerated outside) ---
    out_train = cartpole_embedder_forward(
        params, x, B=B, dropout_p=dropout_p, training=True, dropout_key=kd)
    out_train = jax.block_until_ready(out_train)

    emb_p = ((embedding_size + LANE - 1) // LANE) * LANE
    rand_ref = jax.random.uniform(kd, (B * N, emb_p), jnp.float32)[:, :embedding_size]
    keep_ref = rand_ref >= dropout_p
    h_drop = jnp.where(keep_ref, h_ref * (1.0 / (1.0 - dropout_p)), 0.0)
    y_train_ref = h_drop @ params["w3"] + params["b3"]
    assert out_train.shape == (B * N, embedding_size)
    assert jnp.allclose(out_train, y_train_ref, atol=1e-5, rtol=1e-5), "train mismatch"

    print("KERNEL_OK")
</pallas_src>

<mosaic_0001>
module attributes {stable_mosaic.version = 11 : i64} {
  func.func @_embedder_kernel(%arg0: i32, %arg1: memref<8x4xf32, #tpu.memory_space<vmem>>, %arg2: memref<4x128xf32, #tpu.memory_space<vmem>>, %arg3: memref<1x128xf32, #tpu.memory_space<vmem>>, %arg4: memref<128x128xf32, #tpu.memory_space<vmem>>, %arg5: memref<1x128xf32, #tpu.memory_space<vmem>>, %arg6: memref<32x128xf32, #tpu.memory_space<vmem>>, %arg7: memref<32x128xf32, #tpu.memory_space<vmem>>) attributes {dimension_semantics = [#tpu.dimension_semantics<parallel>], iteration_bounds = array<i64: 1>, scalar_prefetch = 0 : i64, scratch_operands = 0 : i64, tpu.core_type = #tpu.core_type<tc>, window_params = [{pipeline_mode = #tpu.pipeline_mode<synchronous>, transform_indices = @transform_0, window_bounds = array<i64: 8, 4>}, {pipeline_mode = #tpu.pipeline_mode<synchronous>, transform_indices = @transform_1, window_bounds = array<i64: 4, 128>}, {pipeline_mode = #tpu.pipeline_mode<synchronous>, transform_indices = @transform_2, window_bounds = array<i64: 1, 128>}, {pipeline_mode = #tpu.pipeline_mode<synchronous>, transform_indices = @transform_3, window_bounds = array<i64: 128, 128>}, {pipeline_mode = #tpu.pipeline_mode<synchronous>, transform_indices = @transform_4, window_bounds = array<i64: 1, 128>}, {transform_indices = @transform_5, window_bounds = array<i64: 32, 128>}, {transform_indices = @transform_6, window_bounds = array<i64: 32, 128>}]} {
    %c0 = arith.constant 0 : index
    %c0_0 = arith.constant 0 : index
    %0 = vector.load %arg1[%c0, %c0_0] : memref<8x4xf32, #tpu.memory_space<vmem>>, vector<8x4xf32>
    %c0_1 = arith.constant 0 : index
    %c0_2 = arith.constant 0 : index
    %1 = vector.load %arg2[%c0_1, %c0_2] : memref<4x128xf32, #tpu.memory_space<vmem>>, vector<4x128xf32>
    %cst = arith.constant dense<0.000000e+00> : vector<8x128xf32>
    %2 = tpu.matmul %0, %1, %cst {dimension_numbers = #tpu.dot_dimension_numbers<[1], [0], [0], [1], [0, 0, 1, 1], [], []>} : vector<8x4xf32>, vector<4x128xf32>, vector<8x128xf32> -> vector<8x128xf32>
    %c0_3 = arith.constant 0 : index
    %c0_4 = arith.constant 0 : index
    %3 = vector.load %arg3[%c0_3, %c0_4] : memref<1x128xf32, #tpu.memory_space<vmem>>, vector<1x128xf32>
    %4 = vector.broadcast %3 : vector<1x128xf32> to vector<8x128xf32>
    %5 = arith.addf %2, %4 : vector<8x128xf32>
    %cst_5 = arith.constant 0.000000e+00 : f32
    %6 = vector.broadcast %cst_5 : f32 to vector<8x128xf32>
    %7 = arith.maximumf %5, %6 : vector<8x128xf32>
    %8 = tpu.concatenate %7, %7, %7, %7 in 0 : vector<8x128xf32>, vector<8x128xf32>, vector<8x128xf32>, vector<8x128xf32> -> vector<32x128xf32>
    %c0_6 = arith.constant 0 : index
    %c0_7 = arith.constant 0 : index
    %9 = vector.load %arg6[%c0_6, %c0_7] : memref<32x128xf32, #tpu.memory_space<vmem>>, vector<32x128xf32>
    %cst_8 = arith.constant 0.000000e+00 : f32
    %10 = vector.broadcast %cst_8 : f32 to vector<32x128xf32>
    %11 = arith.cmpf oge, %9, %10 : vector<32x128xf32>
    %cst_9 = arith.constant 1.000000e+00 : f32
    %12 = vector.broadcast %cst_9 : f32 to vector<32x128xf32>
    %13 = arith.mulf %8, %12 : vector<32x128xf32>
    %cst_10 = arith.constant 0.000000e+00 : f32
    %14 = vector.broadcast %cst_10 : f32 to vector<32x128xf32>
    %15 = arith.select %11, %13, %14 : vector<32x128xi1>, vector<32x128xf32>
    %c0_11 = arith.constant 0 : index
    %c0_12 = arith.constant 0 : index
    %16 = vector.load %arg4[%c0_11, %c0_12] : memref<128x128xf32, #tpu.memory_space<vmem>>, vector<128x128xf32>
    %cst_13 = arith.constant dense<0.000000e+00> : vector<32x128xf32>
    %17 = tpu.matmul %15, %16, %cst_13 {dimension_numbers = #tpu.dot_dimension_numbers<[1], [0], [0], [1], [0, 0, 1, 1], [], []>} : vector<32x128xf32>, vector<128x128xf32>, vector<32x128xf32> -> vector<32x128xf32>
    %c0_14 = arith.constant 0 : index
    %c0_15 = arith.constant 0 : index
    %18 = vector.load %arg5[%c0_14, %c0_15] : memref<1x128xf32, #tpu.memory_space<vmem>>, vector<1x128xf32>
    %19 = vector.broadcast %18 : vector<1x128xf32> to vector<32x128xf32>
    %20 = arith.addf %17, %19 : vector<32x128xf32>
    %c0_16 = arith.constant 0 : index
    %c0_17 = arith.constant 0 : index
    %21 = vector.load %arg7[%c0_16, %c0_17] : memref<32x128xf32, #tpu.memory_space<vmem>>, vector<32x128xf32>
    tpu.vector_store %arg7[%c0_16, %c0_17], %20 {strides = array<i32>} : memref<32x128xf32, #tpu.memory_space<vmem>>, vector<32x128xf32>,
    return
  }
  func.func @transform_0(%arg0: i32) -> (i32, i32) {
    %c0_i32 = arith.constant 0 : i32
    %c0_i32_0 = arith.constant 0 : i32
    %c0_i32_1 = arith.constant 0 : i32
    return %c0_i32, %c0_i32_0 : i32, i32
  }
  func.func @transform_1(%arg0: i32) -> (i32, i32) {
    %c0_i32 = arith.constant 0 : i32
    %c0_i32_0 = arith.constant 0 : i32
    %c0_i32_1 = arith.constant 0 : i32
    return %c0_i32, %c0_i32_0 : i32, i32
  }
  func.func @transform_2(%arg0: i32) -> (i32, i32) {
    %c0_i32 = arith.constant 0 : i32
    %c0_i32_0 = arith.constant 0 : i32
    %c0_i32_1 = arith.constant 0 : i32
    return %c0_i32, %c0_i32_0 : i32, i32
  }
  func.func @transform_3(%arg0: i32) -> (i32, i32) {
    %c0_i32 = arith.constant 0 : i32
    %c0_i32_0 = arith.constant 0 : i32
    %c0_i32_1 = arith.constant 0 : i32
    return %c0_i32, %c0_i32_0 : i32, i32
  }
  func.func @transform_4(%arg0: i32) -> (i32, i32) {
    %c0_i32 = arith.constant 0 : i32
    %c0_i32_0 = arith.constant 0 : i32
    %c0_i32_1 = arith.constant 0 : i32
    return %c0_i32, %c0_i32_0 : i32, i32
  }
  func.func @transform_5(%arg0: i32) -> (i32, i32) {
    %c0_i32 = arith.constant 0 : i32
    %c0_i32_0 = arith.constant 0 : i32
    return %arg0, %c0_i32 : i32, i32
  }
  func.func @transform_6(%arg0: i32) -> (i32, i32) {
    %c0_i32 = arith.constant 0 : i32
    %c0_i32_0 = arith.constant 0 : i32
    return %arg0, %c0_i32 : i32, i32
  }
}

</mosaic_0001>

<bundles_post_ra>
// kernel: tpu_custom_call.1
= control target key start
LH: loop header
LB: loop body
LE: loop exit
PB: predicated region body
PF: predicated region fallthrough
CT: control target
= control target key end

     0   :  { %11 = vsyncpa [#allocation3], 0  ;;  %s581_s0 = inlined_call_operand.vmem [shape: f32[8,4], index: 0, kind: input, shape index: {}]   ;;  %s582_s1 = inlined_call_operand.vmem [shape: f32[4,128], index: 1, kind: input, shape index: {}]   ;;  %s583_s2 = inlined_call_operand.vmem [shape: f32[1,128], index: 2, kind: input, shape index: {}]   ;;  %s584_s3 = inlined_call_operand.hbm [shape: f32[128,128], index: 3, kind: input, shape index: {}]   ;;  %s585_s4 = inlined_call_operand.vmem [shape: f32[1,128], index: 4, kind: input, shape index: {}]   ;;  %s586_s5 = inlined_call_operand.hbm [shape: f32[32,128], index: 5, kind: input, shape index: {}]   ;;  %s587_s6 = inlined_call_operand.hbm [shape: f32[32,128], index: 6, kind: output, shape index: {}]  }
   0x1   :  { %12 = vsyncpa [#allocation6], 0 }
   0x2   :  { %13 = vsyncpa [#allocation4], 0  ;;  %s482_s21 = smov [#allocation2]   ;;  %s410_s25 = scalar_lea.hbm %s584_s3, 2048 }
   0x3   :  { %s25_s22 = sshll.u32 %s482_s21, 4  ;;  %p411_p0 = scmp.ne.s32.totalorder %s584_s3, %s410_s25  ;;  %s26_s22 = int_to_ptr.vmem [resolvable:$true] %s25_s22 }
   0x4   :  { %p414_p1 = scmp.lt.u32.totalorder %s410_s25, %s584_s3 }
   0x6   :  { %p416_p2 = pnand %p414_p1, %p411_p0 }
   0x8   :  { %419 = shalt.err (!%p416_p2)
}
   0x9   :  { %s420_s30 = scalar_lea.vmem %s26_s22, 2048  ;;  %p425_p4 = scmp.lt.s32.totalorder %s26_s22, %s26_s22 }
   0xa   :  { %p421_p3 = scmp.ne.s32.totalorder %s26_s22, %s420_s30  ;;  %p426_p5 = scmp.lt.s32.totalorder %s420_s30, %s420_s30 }
   0xc   :  { %p427_p6 = por %p426_p5, %p425_p4 }
   0xe   :  { %p428_p7 = pnand %p427_p6, %p421_p3 }
  0x10   :  { %431 = shalt.err (!%p428_p7)
}
  0x11   :  { %s483_s7 = smov 128   ;;  %s484_s8 = smov 8  }
  0x12   :  { %31 = dma.hbm_to_vmem [thread:$0]  %s584_s3, 2048, %s26_s22, [#allocation3], %s483_s7, %s483_s7, %s484_s8  }
  0x13   :  { %s485_s11 = smov [#allocation5]   ;;  %s432_s15 = scalar_lea.hbm %s586_s5, 512 }
  0x14   :  { %s39_s12 = sshll.u32 %s485_s11, 4  ;;  %p433_p8 = scmp.ne.s32.totalorder %s586_s5, %s432_s15  ;;  %s40_s12 = int_to_ptr.vmem [resolvable:$true] %s39_s12 }
  0x15   :  { %p436_p9 = scmp.lt.u32.totalorder %s432_s15, %s586_s5 }
  0x17   :  { %p438_p10 = pnand %p436_p9, %p433_p8 }
  0x19   :  { %441 = shalt.err (!%p438_p10)
}
  0x1a   :  { %s442_s20 = scalar_lea.vmem %s40_s12, 512  ;;  %p447_p12 = scmp.lt.s32.totalorder %s40_s12, %s40_s12 }
  0x1b   :  { %p443_p11 = scmp.ne.s32.totalorder %s40_s12, %s442_s20  ;;  %p448_p13 = scmp.lt.s32.totalorder %s442_s20, %s442_s20 }
  0x1d   :  { %p449_p0 = por %p448_p13, %p447_p12 }
  0x1f   :  { %p450_p1 = pnand %p449_p0, %p443_p11 }
  0x21   :  { %453 = shalt.err (!%p450_p1)
}
  0x22   :  { %45 = dma.hbm_to_vmem [thread:$0]  %s586_s5, 512, %s40_s12, [#allocation6], %s483_s7, %s483_s7, %s484_s8  }
  0x23   :  { %476 = dma.done.wait [#allocation3], 2048  }
  0x24   :  { %477 = vsyncadd [#allocation3], 4294965248 }
  0x25   :  { %478 = dma.done.wait [#allocation6], 512  }
  0x26   :  { %479 = vsyncadd [#allocation6], 4294966784  ;;  %v486_v0 = vmov 0.0   ;;  %vm487_vm0 = vmmov 0   ;;  %vm65_vm1 = vcmask 1043456   ;;  %vm61_vm2 = vcmask 31744  }
  0x27   :  { %312 = vmatprep.subr.mxu0 %v486_v0  ;;  %314 = vmatprep.mubr.msk.f32.mxu0 %vm487_vm0, %v486_v0  ;;  %v53_v1 = vld [vmem:[%s582_s1] sm:$0xf]  ;;  %v153_v4 = vld [vmem:[#allocation2 + $0x8] sm:$0xff]  ;;  %v154_v5 = vld [vmem:[#allocation2 + $0x10] sm:$0xff] }
  0x28   :  { %v52_v2 = vld [vmem:[%s581_s0] sm:$0xff]  ;;  %313 = vmatpush3.msk.msra.mxu0 %vm65_vm1, %v53_v1  ;;  %v155_v6 = vld [vmem:[#allocation2 + $0x18] sm:$0xff]  ;;  %v157_v10 = vld [vmem:[#allocation2 + $0x28] sm:$0xff] }
  0x29   :  { %v152_v3 = vld [vmem:[#allocation2] sm:$0xff]  ;;  %315 = vmatmul.mubr.msk.f32.vlgmr.msra.gmra.mrb[0].mxu0 %vm61_vm2, %v52_v2  ;;  %v359_v8 = vpack.c.bf16 %v155_v6, %v154_v5  ;;  %v158_v12 = vld [vmem:[#allocation2 + $0x30] sm:$0xff]  ;;  %v159_v13 = vld [vmem:[#allocation2 + $0x38] sm:$0xff] }
  0x2a   :  { %v355_v7 = vpack.c.bf16 %v153_v4, %v152_v3  ;;  %v156_v9 = vld [vmem:[#allocation2 + $0x20] sm:$0xff]  ;;  %v367_v14 = vpack.c.bf16 %v159_v13, %v158_v12  ;;  %v161_v16 = vld [vmem:[#allocation2 + $0x48] sm:$0xff]  ;;  %v162_v18 = vld [vmem:[#allocation2 + $0x50] sm:$0xff] }
  0x2b   :  { %v363_v11 = vpack.c.bf16 %v157_v10, %v156_v9  ;;  %v160_v15 = vld [vmem:[#allocation2 + $0x40] sm:$0xff]  ;;  %v163_v19 = vld [vmem:[#allocation2 + $0x58] sm:$0xff]  ;;  %v165_v22 = vld [vmem:[#allocation2 + $0x68] sm:$0xff] }
  0x2c   :  { %356 = vmatprep.subr.bf16.mxu0 %v355_v7  ;;  %387 = vmatprep.subr.bf16.mxu1 %v355_v7  ;;  %v371_v17 = vpack.c.bf16 %v161_v16, %v160_v15  ;;  %v375_v20 = vpack.c.bf16 %v163_v19, %v162_v18  ;;  %v164_v21 = vld [vmem:[#allocation2 + $0x60] sm:$0xff]  ;;  %v166_v24 = vld [vmem:[#allocation2 + $0x70] sm:$0xff]  ;;  %v167_v25 = vld [vmem:[#allocation2 + $0x78] sm:$0xff] }
  0x2d   :  { %358 = vmatpush3.bf16.msra.mxu0 %v355_v7  ;;  %395 = vmatpush3.bf16.msra.mxu1 %v355_v7  ;;  %v379_v23 = vpack.c.bf16 %v165_v22, %v164_v21  ;;  %v383_v26 = vpack.c.bf16 %v167_v25, %v166_v24  ;;  %v282_v27 = vld [vmem:[%s583_s2] ss:$0 sm:$0xff]  ;;  %v142_v29 = vld [vmem:[#allocation5 + $0x10] sm:$0xff]  ;;  %v141_v31 = vld [vmem:[#allocation5 + $0x8] sm:$0xff]  ;;  %s488_s2 = smov [#allocation7]  }
  0x2e   :  { %360 = vmatprep.subr.bf16.mxu0 %v359_v8  ;;  %388 = vmatprep.subr.bf16.mxu1 %v359_v8  ;;  %v140_v28 = vld [vmem:[#allocation5] sm:$0xff]  ;;  %v143_v32 = vld [vmem:[#allocation5 + $0x18] sm:$0xff]  ;;  %vm146_vm4 = vcmp.ge.f32.partialorder %v142_v29, 0.0  ;;  %vm145_vm5 = vcmp.ge.f32.partialorder %v141_v31, 0.0  ;;  %s269_s27 = sshll.u32 %s488_s2, 4  ;;  %s270_s27 = int_to_ptr.vmem [resolvable:$true] %s269_s27 }
  0x2f   :  { %vm144_vm3 = vcmp.ge.f32.partialorder %v140_v28, 0.0  ;;  %vm147_vm6 = vcmp.ge.f32.partialorder %v143_v32, 0.0  ;;  %v285_v36 = vld [vmem:[%s585_s4] ss:$0 sm:$0xff]  ;;  %s454_s28 = scalar_lea.vmem %s270_s27, 512  ;;  %p459_p3 = scmp.lt.s32.totalorder %s270_s27, %s270_s27 }
  0x30   :  { %p455_p2 = scmp.ne.s32.totalorder %s270_s27, %s454_s28  ;;  %p460_p4 = scmp.lt.s32.totalorder %s454_s28, %s454_s28 }
  0x31   :  { %362 = vmatpush3.bf16.msra.mxu0 %v359_v8  ;;  %396 = vmatpush3.bf16.msra.mxu1 %v359_v8 }
  0x32   :  { %364 = vmatprep.subr.bf16.mxu0 %v363_v11  ;;  %389 = vmatprep.subr.bf16.mxu1 %v363_v11  ;;  %p461_p5 = por %p460_p4, %p459_p3 }
  0x34   :  { %p462_p6 = pnand %p461_p5, %p455_p2 }
  0x35   :  { %366 = vmatpush3.bf16.msra.mxu0 %v363_v11  ;;  %397 = vmatpush3.bf16.msra.mxu1 %v363_v11 }
  0x36   :  { %368 = vmatprep.subr.bf16.mxu0 %v367_v14  ;;  %390 = vmatprep.subr.bf16.mxu1 %v367_v14 }
  0x39   :  { %370 = vmatpush3.bf16.msra.mxu0 %v367_v14  ;;  %398 = vmatpush3.bf16.msra.mxu1 %v367_v14 }
  0x3a   :  { %372 = vmatprep.subr.bf16.mxu0 %v371_v17  ;;  %391 = vmatprep.subr.bf16.mxu1 %v371_v17 }
  0x3d   :  { %374 = vmatpush3.bf16.msra.mxu0 %v371_v17  ;;  %399 = vmatpush3.bf16.msra.mxu1 %v371_v17 }
  0x3e   :  { %376 = vmatprep.subr.bf16.mxu0 %v375_v20  ;;  %392 = vmatprep.subr.bf16.mxu1 %v375_v20 }
  0x41   :  { %378 = vmatpush3.bf16.msra.mxu0 %v375_v20  ;;  %400 = vmatpush3.bf16.msra.mxu1 %v375_v20 }
  0x42   :  { %380 = vmatprep.subr.bf16.mxu0 %v379_v23  ;;  %393 = vmatprep.subr.bf16.mxu1 %v379_v23 }
  0x45   :  { %382 = vmatpush3.bf16.msra.mxu0 %v379_v23  ;;  %401 = vmatpush3.bf16.msra.mxu1 %v379_v23 }
  0x46   :  { %384 = vmatprep.subr.bf16.mxu0 %v383_v26  ;;  %394 = vmatprep.subr.bf16.mxu1 %v383_v26 }
  0x49   :  { %386 = vmatpush3.bf16.msra.mxu0 %v383_v26  ;;  %402 = vmatpush3.bf16.msra.mxu1 %v383_v26 }
  0xfc   :  { %v135_v30 = vpop.f32.mrb[0].mxu0 }
  0xfd   :  { %v136_v33 = vadd.f32 %v282_v27, %v135_v30  ;;  %v316_v34 = vpop.f32.mrb[1].mxu0 }
  0xff   :  { %v139_v35 = vmax.f32 %v136_v33, 0.0 }
 0x101   :  { %349 = vmatprep.mubr.msk.f32.mxu0 %vm144_vm3, %v139_v35  ;;  %352 = vmatprep.mubr.msk.f32.mxu1 %vm146_vm4, %v139_v35 }
 0x102   :  { %350 = vmatmul.mubr.msk.f32.vlgmr.msra.gmra.mrb[2].mxu0 %vm145_vm5, %v139_v35  ;;  %353 = vmatmul.mubr.msk.f32.vlgmr.msra.gmra.mrb[0].mxu1 %vm147_vm6, %v139_v35 }
 0x1d5   :  { %v351_v37 = vpop.f32.mrb[2].mxu0  ;;  %v354_v38 = vpop.f32.mrb[0].mxu1 }
 0x1d6   :  { %v247_v39 = vadd.f32 %v351_v37, %v285_v36  ;;  %v257_v40 = vadd.f32 %v354_v38, %v285_v36  ;;  %v241_v41 = vpop.f32.mrb[3].mxu0  ;;  %v251_v42 = vpop.f32.mrb[1].mxu1 }
 0x1d7   :  { %v242_v43 = vadd.f32 %v285_v36, %v241_v41  ;;  %v252_v44 = vadd.f32 %v285_v36, %v251_v42 }
 0x1d8   :  { %261 = vst [vmem:[#allocation7 + $0x8] sm:$0xff] %v247_v39  ;;  %263 = vst [vmem:[#allocation7 + $0x18] sm:$0xff] %v257_v40 }
 0x1d9   :  { %260 = vst [vmem:[#allocation7] sm:$0xff] %v242_v43  ;;  %262 = vst [vmem:[#allocation7 + $0x10] sm:$0xff] %v252_v44 }
 0x1da   :  { %465 = shalt.err (!%p462_p6)
}
 0x1db   :  { %s466_s30 = scalar_lea.hbm %s587_s6, 512 }
 0x1dc   :  { %p467_p7 = scmp.ne.s32.totalorder %s587_s6, %s466_s30  ;;  %p470_p8 = scmp.lt.u32.totalorder %s466_s30, %s587_s6 }
 0x1de   :  { %p472_p9 = pnand %p470_p8, %p467_p7 }
 0x1e0   :  { %475 = shalt.err (!%p472_p9)
}
 0x1e1   :  { %275 = dma.vmem_to_hbm [thread:$0]  %s270_s27, 512, %s587_s6, [#allocation4], %s483_s7, %s483_s7, %s484_s8  }
 0x1e2   :  { %480 = dma.done.wait [#allocation4], 512  }
 0x1e3   :  { %481 = vsyncadd [#allocation4], 4294966784 }
 0x1e4   :  { %279 = vsyncpa [#allocation3], 1 }
 0x1e5   :  { %280 = vsyncpa [#allocation6], 1 }
 0x1e6   :  { %281 = vsyncpa [#allocation4], 1 }

</bundles_post_ra>
